<compile_context>
chip_gen: v5e
topology: v5e:2x2
jax: 0.10.0
libtpu: 0.0.40
codegen_flags: <defaults>
</compile_context>

<pallas_src>
import functools

import jax
import jax.numpy as jnp
from jax.experimental import pallas as pl
from jax.experimental.pallas import tpu as pltpu


# ----------------------------------------------------------------------------
# Segment mean (scatter_mean) kernel
# ----------------------------------------------------------------------------
def _segment_mean_kernel(seg_ref, val_ref, o_ref, acc_sum, acc_cnt,
                         *, total_rows, num_segments):
    """Accumulate one_hot(seg)^T @ vals over row tiles; finalize mean."""
    i = pl.program_id(0)
    nsteps = pl.num_programs(0)

    @pl.when(i == 0)
    def _init():
        acc_sum[...] = jnp.zeros_like(acc_sum)
        acc_cnt[...] = jnp.zeros_like(acc_cnt)

    tr = val_ref.shape[0]          # rows in this tile
    n_seg_pad = acc_sum.shape[0]   # lane-padded number of segments (>=128)

    # Mask rows past the end of the array (partial last tile).
    row_ids = jax.lax.broadcasted_iota(jnp.int32, (tr, 1), 0) + i * tr
    valid = row_ids < total_rows

    seg = seg_ref[...]                                             # (tr, 1) int32
    lane_ids = jax.lax.broadcasted_iota(jnp.int32, (tr, n_seg_pad), 1)
    onehot = ((seg == lane_ids) & valid).astype(val_ref.dtype)     # (tr, n_seg_pad)

    vals = val_ref[...]                                            # (tr, F), native dtype
    dn = (((0,), (0,)), ((), ()))                                  # contract over rows
    acc_sum[...] += jax.lax.dot_general(onehot, vals, dn,
                                        preferred_element_type=jnp.float32)
    ones_col = jnp.ones((tr, 1), val_ref.dtype)
    acc_cnt[...] += jax.lax.dot_general(onehot, ones_col, dn,
                                        preferred_element_type=jnp.float32)

    @pl.when(i == nsteps - 1)
    def _finalize():
        denom = jnp.maximum(acc_cnt[...], 1.0)                     # empty segments -> 0
        mean = acc_sum[...] / denom
        o_ref[...] = mean[:num_segments, :].astype(o_ref.dtype)


def _segment_mean(values, seg_ids, num_segments, *, tile_rows=1024, lane_pad=128):
    """scatter_mean(values, seg_ids, dim=0) with dim_size=num_segments."""
    R, F = values.shape
    n_seg_pad = max(lane_pad, ((num_segments + lane_pad - 1) // lane_pad) * lane_pad)
    tr = R if R <= tile_rows else tile_rows          # tile_rows is a multiple of 8
    grid = (pl.cdiv(R, tr),)

    seg2d = seg_ids.reshape(R, 1).astype(jnp.int32)

    kernel = functools.partial(_segment_mean_kernel,
                               total_rows=R, num_segments=num_segments)

    itemsize = jnp.dtype(values.dtype).itemsize
    cost = pl.CostEstimate(
        flops=int(2 * R * n_seg_pad * (F + 1)),
        transcendentals=0,
        bytes_accessed=int(R * F * itemsize + R * 4 + num_segments * F * 4),
    )

    return pl.pallas_call(
        kernel,
        out_shape=jax.ShapeDtypeStruct((num_segments, F), jnp.float32),
        grid=grid,
        in_specs=[
            pl.BlockSpec((tr, 1), lambda i: (i, 0)),     # segment ids per row
            pl.BlockSpec((tr, F), lambda i: (i, 0)),     # values tile
        ],
        out_specs=pl.BlockSpec((num_segments, F), lambda i: (0, 0)),
        scratch_shapes=[
            pltpu.VMEM((n_seg_pad, F), jnp.float32),     # per-segment sums
            pltpu.VMEM((n_seg_pad, 1), jnp.float32),     # per-segment counts
        ],
        compiler_params=pltpu.CompilerParams(
            dimension_semantics=("arbitrary",),          # reduction over row tiles
        ),
        cost_estimate=cost,
    )(seg2d, values)


# ----------------------------------------------------------------------------
# phi_u: fused MLP on the concatenated global features
# ----------------------------------------------------------------------------
def _phi_u_kernel(xa_ref, ea_ref, u_ref, w1x_ref, w1e_ref, w1u_ref,
                  b1_ref, w2_ref, b2_ref, o_ref):
    """o = relu([xa|ea|u] @ W1 + b1) @ W2 + b2, with W1 split by row blocks."""
    h = jnp.dot(xa_ref[...], w1x_ref[...], preferred_element_type=jnp.float32)
    h = h + jnp.dot(ea_ref[...], w1e_ref[...], preferred_element_type=jnp.float32)
    h = h + jnp.dot(u_ref[...], w1u_ref[...], preferred_element_type=jnp.float32)
    h = h + b1_ref[...]                      # (1, hidden) broadcast, f32 epilogue
    h = jnp.maximum(h, 0.0)
    y = jnp.dot(h.astype(w2_ref.dtype), w2_ref[...],
                preferred_element_type=jnp.float32)
    y = y + b2_ref[...]
    o_ref[...] = y.astype(o_ref.dtype)


# ----------------------------------------------------------------------------
# GlobalModel forward
# ----------------------------------------------------------------------------
def global_model_forward(x, edge_index, edge_attr, u, batch, params,
                         *, agg_tile_rows=1024, tile_b=1024):
    """Forward pass of GlobalModel (returns phi_u([x_agg, e_agg, u]))."""
    N, f_x = x.shape
    E, f_e = edge_attr.shape
    B, f_u = u.shape
    w1, b1, w2, b2 = params
    b1 = jnp.reshape(b1, (1, -1))
    b2 = jnp.reshape(b2, (1, -1))
    f_in, hidden = w1.shape
    f_u_out = w2.shape[1]
    assert f_in == f_x + f_e + f_u

    # e_batch = batch[row]: trivial length-E gather, done by XLA in the wrapper.
    row = edge_index[0]
    e_batch = jnp.take(batch, row)

    # Per-graph means (scatter_mean) as Pallas segment reductions.
    x_agg = _segment_mean(x, batch, B, tile_rows=agg_tile_rows)
    e_agg = _segment_mean(edge_attr, e_batch, B, tile_rows=agg_tile_rows)

    # Fold the concat [x_agg | e_agg | u] into split W1 row blocks.
    w1x = w1[:f_x]
    w1e = w1[f_x:f_x + f_e]
    w1u = w1[f_x + f_e:]

    tb = B if B <= tile_b else tile_b
    grid = (pl.cdiv(B, tb),)

    cost = pl.CostEstimate(
        flops=int(2 * B * (f_in * hidden + hidden * f_u_out)),
        transcendentals=0,
        bytes_accessed=int(4 * (B * (f_x + f_e + f_u + f_u_out)
                                + f_in * hidden + hidden
                                + hidden * f_u_out + f_u_out)),
    )

    return pl.pallas_call(
        _phi_u_kernel,
        out_shape=jax.ShapeDtypeStruct((B, f_u_out), u.dtype),
        grid=grid,
        in_specs=[
            pl.BlockSpec((tb, f_x), lambda i: (i, 0)),        # x_agg tile
            pl.BlockSpec((tb, f_e), lambda i: (i, 0)),        # e_agg tile
            pl.BlockSpec((tb, f_u), lambda i: (i, 0)),        # u tile
            pl.BlockSpec((f_x, hidden), lambda i: (0, 0)),    # W1[x rows] (resident)
            pl.BlockSpec((f_e, hidden), lambda i: (0, 0)),    # W1[e rows] (resident)
            pl.BlockSpec((f_u, hidden), lambda i: (0, 0)),    # W1[u rows] (resident)
            pl.BlockSpec((1, hidden), lambda i: (0, 0)),      # b1
            pl.BlockSpec((hidden, f_u_out), lambda i: (0, 0)),# W2 (resident)
            pl.BlockSpec((1, f_u_out), lambda i: (0, 0)),     # b2
        ],
        out_specs=pl.BlockSpec((tb, f_u_out), lambda i: (i, 0)),
        compiler_params=pltpu.CompilerParams(
            dimension_semantics=("parallel",),
        ),
        cost_estimate=cost,
    )(x_agg, e_agg, u, w1x, w1e, w1u, b1, w2, b2)


def init_params(key, f_in, hidden, f_u_out, dtype=jnp.float32):
    """phi_u = MLP(f_in -> hidden -> f_u_out), PyTorch-Linear-style init."""
    k1, k2, k3, k4 = jax.random.split(key, 4)
    lim1 = 1.0 / jnp.sqrt(jnp.float32(f_in))
    lim2 = 1.0 / jnp.sqrt(jnp.float32(hidden))
    w1 = jax.random.uniform(k1, (f_in, hidden), dtype, -lim1, lim1)
    b1 = jax.random.uniform(k2, (1, hidden), dtype, -lim1, lim1)
    w2 = jax.random.uniform(k3, (hidden, f_u_out), dtype, -lim2, lim2)
    b2 = jax.random.uniform(k4, (1, f_u_out), dtype, -lim2, lim2)
    return (w1, b1, w2, b2)


if __name__ == "__main__":
    key = jax.random.PRNGKey(0)
    ks = jax.random.split(key, 8)

    # Small shapes consistent with the module.
    B = 2                      # graphs
    N, E = 16, 24              # nodes, edges
    f_x, f_e, f_u = 16, 32, 8  # feature sizes
    hidden, f_u_out = 64, 8

    x = jax.random.normal(ks[0], (N, f_x), jnp.float32)
    edge_attr = jax.random.normal(ks[1], (E, f_e), jnp.float32)
    u = jax.random.normal(ks[2], (B, f_u), jnp.float32)
    row = jax.random.randint(ks[3], (E,), 0, N, jnp.int32)
    col = jax.random.randint(ks[4], (E,), 0, N, jnp.int32)
    edge_index = jnp.stack([row, col], axis=0)
    batch = jnp.repeat(jnp.arange(B, dtype=jnp.int32), N // B)  # nodes -> graphs

    params = init_params(ks[5], f_x + f_e + f_u, hidden, f_u_out)

    out = global_model_forward(x, edge_index, edge_attr, u, batch, params)
    out = jax.block_until_ready(out)

    # Pure-JAX reference of the whole forward.
    def seg_mean(v, s, nseg):
        sums = jax.ops.segment_sum(v, s, num_segments=nseg)
        cnt = jax.ops.segment_sum(jnp.ones((v.shape[0], 1), v.dtype), s,
                                  num_segments=nseg)
        return sums / jnp.maximum(cnt, 1.0)

    e_batch_ref = batch[edge_index[0]]
    x_agg_ref = seg_mean(x, batch, B)
    e_agg_ref = seg_mean(edge_attr, e_batch_ref, B)
    cat = jnp.concatenate([x_agg_ref, e_agg_ref, u], axis=1)
    w1, b1, w2, b2 = params
    ref = jnp.maximum(cat @ w1 + b1, 0.0) @ w2 + b2

    assert out.shape == (B, f_u_out)
    assert jnp.allclose(out, ref, atol=1e-4, rtol=1e-4)

    print("KERNEL_OK")
</pallas_src>

<mosaic_0001>
module attributes {stable_mosaic.version = 11 : i64} {
  func.func @_segment_mean_kernel(%arg0: i32, %arg1: memref<16x1xi32, #tpu.memory_space<vmem>>, %arg2: memref<16x16xf32, #tpu.memory_space<vmem>>, %arg3: memref<2x16xf32, #tpu.memory_space<vmem>>, %arg4: memref<128x16xf32, #tpu.memory_space<vmem>>, %arg5: memref<128x1xf32, #tpu.memory_space<vmem>>) attributes {dimension_semantics = [#tpu.dimension_semantics<arbitrary>], iteration_bounds = array<i64: 1>, scalar_prefetch = 0 : i64, scratch_operands = 2 : i64, tpu.core_type = #tpu.core_type<tc>, window_params = [{transform_indices = @transform_0, window_bounds = array<i64: 16, 1>}, {transform_indices = @transform_1, window_bounds = array<i64: 16, 16>}, {pipeline_mode = #tpu.pipeline_mode<synchronous>, transform_indices = @transform_2, window_bounds = array<i64: 2, 16>}]} {
    %c0_i32 = arith.constant 0 : i32
    %0 = arith.cmpi eq, %arg0, %c0_i32 : i32
    %1 = arith.extui %0 : i1 to i32
    %c0_i32_0 = arith.constant 0 : i32
    %2 = arith.cmpi ne, %1, %c0_i32_0 : i32
    scf.if %2 {
      %cst_17 = arith.constant 0.000000e+00 : f32
      %30 = vector.broadcast %cst_17 : f32 to vector<128x16xf32>
      %c0_18 = arith.constant 0 : index
      %c0_19 = arith.constant 0 : index
      %31 = vector.load %arg4[%c0_18, %c0_19] : memref<128x16xf32, #tpu.memory_space<vmem>>, vector<128x16xf32>
      tpu.vector_store %arg4[%c0_18, %c0_19], %30 {strides = array<i32>} : memref<128x16xf32, #tpu.memory_space<vmem>>, vector<128x16xf32>,
      %cst_20 = arith.constant 0.000000e+00 : f32
      %32 = vector.broadcast %cst_20 : f32 to vector<128x1xf32>
      %c0_21 = arith.constant 0 : index
      %c0_22 = arith.constant 0 : index
      %33 = vector.load %arg5[%c0_21, %c0_22] : memref<128x1xf32, #tpu.memory_space<vmem>>, vector<128x1xf32>
      tpu.vector_store %arg5[%c0_21, %c0_22], %32 {strides = array<i32>} : memref<128x1xf32, #tpu.memory_space<vmem>>, vector<128x1xf32>,
    } else {
    }
    %3 = tpu.iota {dimensions = array<i32: 0>} : vector<16x1xi32>
    %c16_i32 = arith.constant 16 : i32
    %4 = arith.muli %arg0, %c16_i32 : i32
    %5 = vector.broadcast %4 : i32 to vector<16x1xi32>
    %6 = arith.addi %3, %5 : vector<16x1xi32>
    %c16_i32_1 = arith.constant 16 : i32
    %7 = vector.broadcast %c16_i32_1 : i32 to vector<16x1xi32>
    %8 = arith.cmpi slt, %6, %7 : vector<16x1xi32>
    %c0 = arith.constant 0 : index
    %c0_2 = arith.constant 0 : index
    %9 = vector.load %arg1[%c0, %c0_2] : memref<16x1xi32, #tpu.memory_space<vmem>>, vector<16x1xi32>
    %10 = tpu.iota {dimensions = array<i32: 1>} : vector<16x128xi32>
    %11 = vector.broadcast %9 : vector<16x1xi32> to vector<16x128xi32>
    %12 = arith.cmpi eq, %11, %10 : vector<16x128xi32>
    %13 = vector.broadcast %8 : vector<16x1xi1> to vector<16x128xi1>
    %14 = arith.andi %12, %13 : vector<16x128xi1>
    %15 = arith.extui %14 : vector<16x128xi1> to vector<16x128xi32>
    %16 = arith.sitofp %15 : vector<16x128xi32> to vector<16x128xf32>
    %c0_3 = arith.constant 0 : index
    %c0_4 = arith.constant 0 : index
    %17 = vector.load %arg2[%c0_3, %c0_4] : memref<16x16xf32, #tpu.memory_space<vmem>>, vector<16x16xf32>
    %c0_5 = arith.constant 0 : index
    %c0_6 = arith.constant 0 : index
    %18 = vector.load %arg4[%c0_5, %c0_6] : memref<128x16xf32, #tpu.memory_space<vmem>>, vector<128x16xf32>
    %cst = arith.constant dense<0.000000e+00> : vector<128x16xf32>
    %19 = tpu.matmul %16, %17, %cst {dimension_numbers = #tpu.dot_dimension_numbers<[0], [0], [1], [1], [0, 1, 1, 1], [], []>} : vector<16x128xf32>, vector<16x16xf32>, vector<128x16xf32> -> vector<128x16xf32>
    %20 = arith.addf %18, %19 : vector<128x16xf32>
    %c0_7 = arith.constant 0 : index
    %c0_8 = arith.constant 0 : index
    %21 = vector.load %arg4[%c0_7, %c0_8] : memref<128x16xf32, #tpu.memory_space<vmem>>, vector<128x16xf32>
    tpu.vector_store %arg4[%c0_7, %c0_8], %20 {strides = array<i32>} : memref<128x16xf32, #tpu.memory_space<vmem>>, vector<128x16xf32>,
    %cst_9 = arith.constant 1.000000e+00 : f32
    %22 = vector.broadcast %cst_9 : f32 to vector<16x1xf32>
    %c0_10 = arith.constant 0 : index
    %c0_11 = arith.constant 0 : index
    %23 = vector.load %arg5[%c0_10, %c0_11] : memref<128x1xf32, #tpu.memory_space<vmem>>, vector<128x1xf32>
    %cst_12 = arith.constant dense<0.000000e+00> : vector<128x1xf32>
    %24 = tpu.matmul %16, %22, %cst_12 {dimension_numbers = #tpu.dot_dimension_numbers<[0], [0], [1], [1], [0, 1, 1, 1], [], []>} : vector<16x128xf32>, vector<16x1xf32>, vector<128x1xf32> -> vector<128x1xf32>
    %25 = arith.addf %23, %24 : vector<128x1xf32>
    %c0_13 = arith.constant 0 : index
    %c0_14 = arith.constant 0 : index
    %26 = vector.load %arg5[%c0_13, %c0_14] : memref<128x1xf32, #tpu.memory_space<vmem>>, vector<128x1xf32>
    tpu.vector_store %arg5[%c0_13, %c0_14], %25 {strides = array<i32>} : memref<128x1xf32, #tpu.memory_space<vmem>>, vector<128x1xf32>,
    %c0_i32_15 = arith.constant 0 : i32
    %27 = arith.cmpi eq, %arg0, %c0_i32_15 : i32
    %28 = arith.extui %27 : i1 to i32
    %c0_i32_16 = arith.constant 0 : i32
    %29 = arith.cmpi ne, %28, %c0_i32_16 : i32
    scf.if %29 {
      %c0_17 = arith.constant 0 : index
      %c0_18 = arith.constant 0 : index
      %30 = vector.load %arg5[%c0_17, %c0_18] : memref<128x1xf32, #tpu.memory_space<vmem>>, vector<128x1xf32>
      %cst_19 = arith.constant 1.000000e+00 : f32
      %31 = vector.broadcast %cst_19 : f32 to vector<128x1xf32>
      %32 = arith.maximumf %30, %31 : vector<128x1xf32>
      %c0_20 = arith.constant 0 : index
      %c0_21 = arith.constant 0 : index
      %33 = vector.load %arg4[%c0_20, %c0_21] : memref<128x16xf32, #tpu.memory_space<vmem>>, vector<128x16xf32>
      %34 = vector.broadcast %32 : vector<128x1xf32> to vector<128x16xf32>
      %35 = arith.divf %33, %34 : vector<128x16xf32>
      %36 = vector.extract_strided_slice %35 {offsets = [0, 0], sizes = [2, 16], strides = [1, 1]} : vector<128x16xf32> to vector<2x16xf32>
      %c0_22 = arith.constant 0 : index
      %c0_23 = arith.constant 0 : index
      %37 = vector.load %arg3[%c0_22, %c0_23] : memref<2x16xf32, #tpu.memory_space<vmem>>, vector<2x16xf32>
      tpu.vector_store %arg3[%c0_22, %c0_23], %36 {strides = array<i32>} : memref<2x16xf32, #tpu.memory_space<vmem>>, vector<2x16xf32>,
    } else {
    }
    return
  }
  func.func @transform_0(%arg0: i32) -> (i32, i32) {
    %c0_i32 = arith.constant 0 : i32
    %c0_i32_0 = arith.constant 0 : i32
    return %arg0, %c0_i32 : i32, i32
  }
  func.func @transform_1(%arg0: i32) -> (i32, i32) {
    %c0_i32 = arith.constant 0 : i32
    %c0_i32_0 = arith.constant 0 : i32
    return %arg0, %c0_i32 : i32, i32
  }
  func.func @transform_2(%arg0: i32) -> (i32, i32) {
    %c0_i32 = arith.constant 0 : i32
    %c0_i32_0 = arith.constant 0 : i32
    %c0_i32_1 = arith.constant 0 : i32
    return %c0_i32, %c0_i32_0 : i32, i32
  }
}

</mosaic_0001>

<bundles_post_ra>
// kernel: tpu_custom_call.1
= control target key start
LH: loop header
LB: loop body
LE: loop exit
PB: predicated region body
PF: predicated region fallthrough
CT: control target
= control target key end

     0   :  { %s671_s0 = inlined_call_operand.vmem [shape: s32[16,1], index: 0, kind: input, shape index: {}]   ;;  %s672_s1 = inlined_call_operand.vmem [shape: f32[16,16], index: 1, kind: input, shape index: {}]   ;;  %s673_s2 = inlined_call_operand.hbm [shape: f32[2,16], index: 2, kind: output, shape index: {}]  }
   0x1   :  { %v59_v0 = vld [vmem:[%s671_s0] sm:$0xff] }
   0x2   :  { %7 = vsyncpa [#allocation5], 0  ;;  %v507_v1 = vmov 0   ;;  %v60_v2 = vld [vmem:[%s671_s0 + $0x8] sm:$0xff]  ;;  %v81_v4 = vld [vmem:[%s672_s1] sm:$0xff]  ;;  %v508_v5 = vmov 1.0   ;;  %v61_v6 = vlaneseq }
   0x3   :  { %477 = vset.pattern.permute.xlu0 %v507_v1  ;;  %478 = vset.pattern.permute.xlu2 %v507_v1  ;;  %v82_v3 = vld [vmem:[%s672_s1 + $0x8] sm:$0xff]  ;;  %v509_v9 = vmov 0.0   ;;  %vm16_vm2 = vcmask 130048   ;;  %vm33_vm3 = vcmask 7168   ;;  %s510_s0 = smov [#allocation4]   ;;  %s426_s19 = sshll.u32 %s673_s2, 4  ;;  %s427_s19 = int_to_ptr.hbm [resolvable:$true] %s426_s19 }
   0x4   :  { %64 = vperm.xlu0 %477, %v59_v0   ;;  %194 = vmatpush.msra.mxu0 %v82_v3  ;;  %v62_v7 = vand.u32 127, %v61_v6  ;;  %17 = vst.msk [vmem:[#allocation2] sm:$0xff] %vm16_vm2, %v509_v9  ;;  %s424_s1 = sshll.u32 %s510_s0, 4  ;;  %vm417_vm8 = vcmask 123904   ;;  %s425_s1 = int_to_ptr.vmem [resolvable:$true] %s424_s1 }
   0x5   :  { %307 = vmatpush.msra.mxu1 %v508_v5  ;;  %469 = vmatpush.msra.mxu2 %v82_v3  ;;  %18 = vst.msk [vmem:[#allocation2 + $0x8] sm:$0xff] %vm16_vm2, %v509_v9 }
   0x6   :  { %471 = vmatpush.msra.mxu3 %v508_v5  ;;  %195 = vmatpush.msra.mxu0 %v81_v4  ;;  %19 = vst.msk [vmem:[#allocation2 + $0x10] sm:$0xff] %vm16_vm2, %v509_v9 }
   0x7   :  { %308 = vmatpush.msra.mxu1 %v508_v5  ;;  %470 = vmatpush.msra.mxu2 %v81_v4  ;;  %20 = vst.msk [vmem:[#allocation2 + $0x18] sm:$0xff] %vm16_vm2, %v509_v9 }
   0x8   :  { %472 = vmatpush.msra.mxu3 %v508_v5  ;;  %21 = vst.msk [vmem:[#allocation2 + $0x20] sm:$0xff] %vm16_vm2, %v509_v9 }
   0x9   :  { %22 = vst.msk [vmem:[#allocation2 + $0x28] sm:$0xff] %vm16_vm2, %v509_v9 }
   0xa   :  { %23 = vst.msk [vmem:[#allocation2 + $0x30] sm:$0xff] %vm16_vm2, %v509_v9 }
   0xb   :  { %24 = vst.msk [vmem:[#allocation2 + $0x38] sm:$0xff] %vm16_vm2, %v509_v9  ;;  %v83_v29 = vld [vmem:[#allocation2] sm:$0xff] }
   0xc   :  { %67 = vperm.xlu0 %477, %v60_v2   ;;  %25 = vst.msk [vmem:[#allocation2 + $0x40] sm:$0xff] %vm16_vm2, %v509_v9  ;;  %v84_v35 = vld [vmem:[#allocation2 + $0x8] sm:$0xff] }
   0xd   :  { %26 = vst.msk [vmem:[#allocation2 + $0x48] sm:$0xff] %vm16_vm2, %v509_v9  ;;  %v85_v43 = vld [vmem:[#allocation2 + $0x10] sm:$0xff] }
   0xe   :  { %27 = vst.msk [vmem:[#allocation2 + $0x50] sm:$0xff] %vm16_vm2, %v509_v9  ;;  %v86_v49 = vld [vmem:[#allocation2 + $0x18] sm:$0xff] }
   0xf   :  { %28 = vst.msk [vmem:[#allocation2 + $0x58] sm:$0xff] %vm16_vm2, %v509_v9  ;;  %v87_v55 = vld [vmem:[#allocation2 + $0x20] sm:$0xff] }
  0x10   :  { %29 = vst.msk [vmem:[#allocation2 + $0x60] sm:$0xff] %vm16_vm2, %v509_v9  ;;  %v88_v61 = vld [vmem:[#allocation2 + $0x28] sm:$0xff] }
  0x11   :  { %30 = vst.msk [vmem:[#allocation2 + $0x68] sm:$0xff] %vm16_vm2, %v509_v9  ;;  %v89_v3 = vld [vmem:[#allocation2 + $0x30] sm:$0xff] }
  0x12   :  { %31 = vst.msk [vmem:[#allocation2 + $0x70] sm:$0xff] %vm16_vm2, %v509_v9 }
  0x13   :  { %32 = vst.msk [vmem:[#allocation2 + $0x78] sm:$0xff] %vm16_vm2, %v509_v9 }
  0x14   :  { %34 = vst.msk [vmem:[#allocation3] sm:$0xff] %vm33_vm3, %v509_v9 }
  0x15   :  { %35 = vst.msk [vmem:[#allocation3 + $0x8] sm:$0xff] %vm33_vm3, %v509_v9 }
  0x16   :  { %36 = vst.msk [vmem:[#allocation3 + $0x10] sm:$0xff] %vm33_vm3, %v509_v9 }
  0x17   :  { %37 = vst.msk [vmem:[#allocation3 + $0x18] sm:$0xff] %vm33_vm3, %v509_v9 }
  0x18   :  { %38 = vst.msk [vmem:[#allocation3 + $0x20] sm:$0xff] %vm33_vm3, %v509_v9 }
  0x19   :  { %39 = vst.msk [vmem:[#allocation3 + $0x28] sm:$0xff] %vm33_vm3, %v509_v9 }
  0x1a   :  { %40 = vst.msk [vmem:[#allocation3 + $0x30] sm:$0xff] %vm33_vm3, %v509_v9 }
  0x1b   :  { %41 = vst.msk [vmem:[#allocation3 + $0x38] sm:$0xff] %vm33_vm3, %v509_v9  ;;  %v277_v30 = vld [vmem:[#allocation3] sm:$0xff] }
  0x1c   :  { %42 = vst.msk [vmem:[#allocation3 + $0x40] sm:$0xff] %vm33_vm3, %v509_v9  ;;  %v278_v36 = vld [vmem:[#allocation3 + $0x8] sm:$0xff] }
  0x1d   :  { %43 = vst.msk [vmem:[#allocation3 + $0x48] sm:$0xff] %vm33_vm3, %v509_v9  ;;  %v279_v44 = vld [vmem:[#allocation3 + $0x10] sm:$0xff] }
  0x1e   :  { %44 = vst.msk [vmem:[#allocation3 + $0x50] sm:$0xff] %vm33_vm3, %v509_v9  ;;  %v280_v50 = vld [vmem:[#allocation3 + $0x18] sm:$0xff] }
  0x1f   :  { %45 = vst.msk [vmem:[#allocation3 + $0x58] sm:$0xff] %vm33_vm3, %v509_v9  ;;  %v281_v56 = vld [vmem:[#allocation3 + $0x20] sm:$0xff] }
  0x20   :  { %46 = vst.msk [vmem:[#allocation3 + $0x60] sm:$0xff] %vm33_vm3, %v509_v9  ;;  %v282_v62 = vld [vmem:[#allocation3 + $0x28] sm:$0xff] }
  0x21   :  { %47 = vst.msk [vmem:[#allocation3 + $0x68] sm:$0xff] %vm33_vm3, %v509_v9  ;;  %v283_v4 = vld [vmem:[#allocation3 + $0x30] sm:$0xff] }
  0x22   :  { %48 = vst.msk [vmem:[#allocation3 + $0x70] sm:$0xff] %vm33_vm3, %v509_v9 }
  0x23   :  { %49 = vst.msk [vmem:[#allocation3 + $0x78] sm:$0xff] %vm33_vm3, %v509_v9 }
  0x76   :  { %v65_v8 = vpop.permute.xlu0 %64 }
  0x77   :  { %vm69_vm0 = vcmp.eq.s32.totalorder %v65_v8, %v62_v7 }
  0x78   :  { %v435_v10 = vsel %vm69_vm0, 1.0, %v509_v9 }
  0x79   :  { %99 = vxpose.xlu1.b32.start [1/2] (short) %v435_v10, 128  ;;  %v284_v10 = vld [vmem:[#allocation3 + $0x38] sm:$0xff] }
  0x7e   :  { %v68_v11 = vpop.permute.xlu0 %67 }
  0x7f   :  { %vm70_vm1 = vcmp.eq.s32.totalorder %v68_v11, %v62_v7 }
  0x80   :  { %v436_v12 = vsel %vm70_vm1, 1.0, %v509_v9  ;;  %v90_v9 = vld [vmem:[#allocation2 + $0x38] sm:$0xff] }
  0x81   :  { %100 = vxpose.xlu1.b32.end [2/2] (short) %v436_v12, 128 }
 0x11d   :  { %v115_v13 = vpop.trf.xlu1 }
 0x11e   :  { %437 = vmatmul.msk.f32.vlgmr.msra.gmra.mxu0 %vm16_vm2, %v115_v13  ;;  %453 = vmatmul.msk.f32.vlgmr.msra.gmra.mxu1 %vm16_vm2, %v115_v13 }
 0x125   :  { %v116_v14 = vpop.trf.xlu1 }
 0x126   :  { %438 = vmatmul.msk.f32.gmra.mxu0 %vm16_vm2, %v116_v14  ;;  %454 = vmatmul.msk.f32.gmra.mxu1 %vm16_vm2, %v116_v14 }
 0x12d   :  { %v117_v15 = vpop.trf.xlu1 }
 0x12e   :  { %439 = vmatmul.msk.f32.gmra.mxu0 %vm16_vm2, %v117_v15  ;;  %455 = vmatmul.msk.f32.gmra.mxu1 %vm16_vm2, %v117_v15  ;;  %v91_v15 = vld [vmem:[#allocation2 + $0x40] sm:$0xff] }
 0x135   :  { %v118_v16 = vpop.trf.xlu1 }
 0x136   :  { %440 = vmatmul.msk.f32.gmra.mxu0 %vm16_vm2, %v118_v16  ;;  %456 = vmatmul.msk.f32.gmra.mxu1 %vm16_vm2, %v118_v16  ;;  %v285_v16 = vld [vmem:[#allocation3 + $0x40] sm:$0xff] }
 0x13d   :  { %v119_v17 = vpop.trf.xlu1 }
 0x13e   :  { %441 = vmatmul.msk.f32.gmra.mxu0 %vm16_vm2, %v119_v17  ;;  %457 = vmatmul.msk.f32.gmra.mxu1 %vm16_vm2, %v119_v17 }
 0x145   :  { %v120_v18 = vpop.trf.xlu1 }
 0x146   :  { %442 = vmatmul.msk.f32.gmra.mxu0 %vm16_vm2, %v120_v18  ;;  %458 = vmatmul.msk.f32.gmra.mxu1 %vm16_vm2, %v120_v18 }
 0x14d   :  { %v121_v19 = vpop.trf.xlu1 }
 0x14e   :  { %443 = vmatmul.msk.f32.gmra.mxu0 %vm16_vm2, %v121_v19  ;;  %459 = vmatmul.msk.f32.gmra.mxu1 %vm16_vm2, %v121_v19 }
 0x155   :  { %v122_v20 = vpop.trf.xlu1 }
 0x156   :  { %444 = vmatmul.msk.f32.gmra.mxu0 %vm16_vm2, %v122_v20  ;;  %460 = vmatmul.msk.f32.gmra.mxu1 %vm16_vm2, %v122_v20 }
 0x15d   :  { %v123_v21 = vpop.trf.xlu1 }
 0x15e   :  { %445 = vmatmul.msk.f32.vlgmr.msra.gmra.mxu2 %vm16_vm2, %v123_v21  ;;  %461 = vmatmul.msk.f32.vlgmr.msra.gmra.mxu3 %vm16_vm2, %v123_v21  ;;  %v92_v21 = vld [vmem:[#allocation2 + $0x48] sm:$0xff] }
 0x165   :  { %v124_v22 = vpop.trf.xlu1 }
 0x166   :  { %446 = vmatmul.msk.f32.gmra.mxu2 %vm16_vm2, %v124_v22  ;;  %462 = vmatmul.msk.f32.gmra.mxu3 %vm16_vm2, %v124_v22  ;;  %v286_v22 = vld [vmem:[#allocation3 + $0x48] sm:$0xff] }
 0x16d   :  { %v125_v23 = vpop.trf.xlu1 }
 0x16e   :  { %447 = vmatmul.msk.f32.gmra.mxu2 %vm16_vm2, %v125_v23  ;;  %463 = vmatmul.msk.f32.gmra.mxu3 %vm16_vm2, %v125_v23 }
 0x175   :  { %v126_v24 = vpop.trf.xlu1 }
 0x176   :  { %448 = vmatmul.msk.f32.gmra.mxu2 %vm16_vm2, %v126_v24  ;;  %464 = vmatmul.msk.f32.gmra.mxu3 %vm16_vm2, %v126_v24 }
 0x17d   :  { %v127_v25 = vpop.trf.xlu1 }
 0x17e   :  { %449 = vmatmul.msk.f32.gmra.mxu2 %vm16_vm2, %v127_v25  ;;  %465 = vmatmul.msk.f32.gmra.mxu3 %vm16_vm2, %v127_v25 }
 0x185   :  { %v128_v26 = vpop.trf.xlu1 }
 0x186   :  { %450 = vmatmul.msk.f32.gmra.mxu2 %vm16_vm2, %v128_v26  ;;  %466 = vmatmul.msk.f32.gmra.mxu3 %vm16_vm2, %v128_v26 }
 0x18d   :  { %v129_v27 = vpop.trf.xlu1 }
 0x18e   :  { %451 = vmatmul.msk.f32.gmra.mxu2 %vm16_vm2, %v129_v27  ;;  %467 = vmatmul.msk.f32.gmra.mxu3 %vm16_vm2, %v129_v27  ;;  %v93_v27 = vld [vmem:[#allocation2 + $0x50] sm:$0xff] }
 0x195   :  { %v130_v28 = vpop.trf.xlu1 }
 0x196   :  { %452 = vmatmul.msk.f32.gmra.mxu2 %vm16_vm2, %v130_v28  ;;  %468 = vmatmul.msk.f32.gmra.mxu3 %vm16_vm2, %v130_v28  ;;  %v287_v28 = vld [vmem:[#allocation3 + $0x50] sm:$0xff] }
 0x19b   :  { %v197_v31 = vpop.f32.mrf.mxu0  ;;  %v310_v32 = vpop.f32.mrf.mxu1 }
 0x19c   :  { %v245_v33 = vadd.f32 %v197_v31, %v83_v29  ;;  %v358_v34 = vadd.f32 %v310_v32, %v277_v30 }
 0x19e   :  { %261 = vst.msk [vmem:[#allocation2] sm:$0xff] %vm16_vm2, %v245_v33  ;;  %v94_v33 = vld [vmem:[#allocation2 + $0x58] sm:$0xff] }
 0x19f   :  { %375 = vst.msk [vmem:[#allocation3] sm:$0xff] %vm33_vm3, %v358_v34  ;;  %v288_v34 = vld [vmem:[#allocation3 + $0x58] sm:$0xff] }
 0x1a3   :  { %v200_v37 = vpop.f32.mrf.mxu0  ;;  %v313_v38 = vpop.f32.mrf.mxu1 }
 0x1a4   :  { %v246_v39 = vadd.f32 %v200_v37, %v84_v35  ;;  %v359_v40 = vadd.f32 %v313_v38, %v278_v36 }
 0x1a6   :  { %262 = vst.msk [vmem:[#allocation2 + $0x8] sm:$0xff] %vm16_vm2, %v246_v39  ;;  %v394_v41 = vld [vmem:[#allocation3] sm:$0xff] }
 0x1a7   :  { %376 = vst.msk [vmem:[#allocation3 + $0x8] sm:$0xff] %vm33_vm3, %v359_v40  ;;  %v395_v42 = vmax.f32 %v394_v41, 1.0  ;;  %v95_v39 = vld [vmem:[#allocation2 + $0x60] sm:$0xff] }
 0x1a8   :  { %v289_v40 = vld [vmem:[#allocation3 + $0x60] sm:$0xff] }
 0x1a9   :  { %399 = vperm.xlu2 %478, %v395_v42  }
 0x1ab   :  { %v203_v45 = vpop.f32.mrf.mxu0  ;;  %v316_v46 = vpop.f32.mrf.mxu1 }
 0x1ac   :  { %v247_v47 = vadd.f32 %v203_v45, %v85_v43  ;;  %v360_v48 = vadd.f32 %v316_v46, %v279_v44  ;;  %v96_v46 = vld [vmem:[#allocation2 + $0x68] sm:$0xff] }
 0x1ae   :  { %263 = vst.msk [vmem:[#allocation2 + $0x10] sm:$0xff] %vm16_vm2, %v247_v47  ;;  %v290_v47 = vld [vmem:[#allocation3 + $0x68] sm:$0xff] }
 0x1af   :  { %377 = vst.msk [vmem:[#allocation3 + $0x10] sm:$0xff] %vm33_vm3, %v360_v48 }
 0x1b3   :  { %v206_v51 = vpop.f32.mrf.mxu0  ;;  %v319_v52 = vpop.f32.mrf.mxu1 }
 0x1b4   :  { %v248_v53 = vadd.f32 %v206_v51, %v86_v49  ;;  %v361_v54 = vadd.f32 %v319_v52, %v280_v50 }
 0x1b6   :  { %264 = vst.msk [vmem:[#allocation2 + $0x18] sm:$0xff] %vm16_vm2, %v248_v53 }
 0x1b7   :  { %378 = vst.msk [vmem:[#allocation3 + $0x18] sm:$0xff] %vm33_vm3, %v361_v54 }
 0x1bb   :  { %v209_v57 = vpop.f32.mrf.mxu0  ;;  %v322_v58 = vpop.f32.mrf.mxu1 }
 0x1bc   :  { %v249_v59 = vadd.f32 %v209_v57, %v87_v55  ;;  %v362_v60 = vadd.f32 %v322_v58, %v281_v56  ;;  %v97_v58 = vld [vmem:[#allocation2 + $0x70] sm:$0xff] }
 0x1be   :  { %265 = vst.msk [vmem:[#allocation2 + $0x20] sm:$0xff] %vm16_vm2, %v249_v59  ;;  %v291_v59 = vld [vmem:[#allocation3 + $0x70] sm:$0xff] }
 0x1bf   :  { %379 = vst.msk [vmem:[#allocation3 + $0x20] sm:$0xff] %vm33_vm3, %v362_v60 }
 0x1c3   :  { %v212_v63 = vpop.f32.mrf.mxu0  ;;  %v325_v0 = vpop.f32.mrf.mxu1 }
 0x1c4   :  { %v250_v1 = vadd.f32 %v212_v63, %v88_v61  ;;  %v363_v2 = vadd.f32 %v325_v0, %v282_v62 }
 0x1c6   :  { %266 = vst.msk [vmem:[#allocation2 + $0x28] sm:$0xff] %vm16_vm2, %v250_v1 }
 0x1c7   :  { %380 = vst.msk [vmem:[#allocation3 + $0x28] sm:$0xff] %vm33_vm3, %v363_v2 }
 0x1cb   :  { %v215_v5 = vpop.f32.mrf.mxu0  ;;  %v328_v6 = vpop.f32.mrf.mxu1 }
 0x1cc   :  { %v251_v7 = vadd.f32 %v215_v5, %v89_v3  ;;  %v364_v8 = vadd.f32 %v328_v6, %v283_v4  ;;  %v396_v3 = vld [vmem:[#allocation2] sm:$0xff]  ;;  %v98_v6 = vld [vmem:[#allocation2 + $0x78] sm:$0xff] }
 0x1ce   :  { %267 = vst.msk [vmem:[#allocation2 + $0x30] sm:$0xff] %vm16_vm2, %v251_v7  ;;  %v292_v7 = vld [vmem:[#allocation3 + $0x78] sm:$0xff] }
 0x1cf   :  { %381 = vst.msk [vmem:[#allocation3 + $0x30] sm:$0xff] %vm33_vm3, %v364_v8 }
 0x1d3   :  { %v218_v11 = vpop.f32.mrf.mxu0  ;;  %v331_v12 = vpop.f32.mrf.mxu1 }
 0x1d4   :  { %v252_v13 = vadd.f32 %v218_v11, %v90_v9  ;;  %v365_v14 = vadd.f32 %v331_v12, %v284_v10 }
 0x1d6   :  { %268 = vst.msk [vmem:[#allocation2 + $0x38] sm:$0xff] %vm16_vm2, %v252_v13 }
 0x1d7   :  { %382 = vst.msk [vmem:[#allocation3 + $0x38] sm:$0xff] %vm33_vm3, %v365_v14 }
 0x1e1   :  { %v221_v17 = vpop.f32.mrf.mxu2  ;;  %v334_v18 = vpop.f32.mrf.mxu3 }
 0x1e2   :  { %v253_v19 = vadd.f32 %v221_v17, %v91_v15  ;;  %v366_v20 = vadd.f32 %v334_v18, %v285_v16 }
 0x1e4   :  { %269 = vst.msk [vmem:[#allocation2 + $0x40] sm:$0xff] %vm16_vm2, %v253_v19 }
 0x1e5   :  { %383 = vst.msk [vmem:[#allocation3 + $0x40] sm:$0xff] %vm33_vm3, %v366_v20 }
 0x1e9   :  { %v224_v23 = vpop.f32.mrf.mxu2  ;;  %v337_v24 = vpop.f32.mrf.mxu3 }
 0x1ea   :  { %v254_v25 = vadd.f32 %v224_v23, %v92_v21  ;;  %v367_v26 = vadd.f32 %v337_v24, %v286_v22 }
 0x1ec   :  { %270 = vst.msk [vmem:[#allocation2 + $0x48] sm:$0xff] %vm16_vm2, %v254_v25 }
 0x1ed   :  { %384 = vst.msk [vmem:[#allocation3 + $0x48] sm:$0xff] %vm33_vm3, %v367_v26 }
 0x1f1   :  { %v227_v29 = vpop.f32.mrf.mxu2  ;;  %v340_v30 = vpop.f32.mrf.mxu3 }
 0x1f2   :  { %v255_v31 = vadd.f32 %v227_v29, %v93_v27  ;;  %v368_v32 = vadd.f32 %v340_v30, %v287_v28 }
 0x1f4   :  { %271 = vst.msk [vmem:[#allocation2 + $0x50] sm:$0xff] %vm16_vm2, %v255_v31 }
 0x1f5   :  { %385 = vst.msk [vmem:[#allocation3 + $0x50] sm:$0xff] %vm33_vm3, %v368_v32 }
 0x1f9   :  { %v230_v35 = vpop.f32.mrf.mxu2  ;;  %v343_v36 = vpop.f32.mrf.mxu3 }
 0x1fa   :  { %v256_v37 = vadd.f32 %v230_v35, %v94_v33  ;;  %v369_v38 = vadd.f32 %v343_v36, %v288_v34 }
 0x1fc   :  { %272 = vst.msk [vmem:[#allocation2 + $0x58] sm:$0xff] %vm16_vm2, %v256_v37 }
 0x1fd   :  { %386 = vst.msk [vmem:[#allocation3 + $0x58] sm:$0xff] %vm33_vm3, %v369_v38 }
 0x201   :  { %v233_v41 = vpop.f32.mrf.mxu2  ;;  %v346_v42 = vpop.f32.mrf.mxu3 }
 0x202   :  { %v257_v43 = vadd.f32 %v233_v41, %v95_v39  ;;  %v370_v44 = vadd.f32 %v346_v42, %v289_v40 }
 0x203   :  { %v400_v45 = vpop.permute.xlu2 %399 }
 0x204   :  { %273 = vst.msk [vmem:[#allocation2 + $0x60] sm:$0xff] %vm16_vm2, %v257_v43  ;;  %479 = vrcp.f32 %v400_v45  ;;  %v413_v55 = vand.u32 2147483648, %v400_v45  ;;  %v411_v57 = vand.u32 2147483647, %v400_v45  ;;  %vm407_vm5 = vweird.f32 %v400_v45 }
 0x205   :  { %387 = vst.msk [vmem:[#allocation3 + $0x60] sm:$0xff] %vm33_vm3, %v370_v44 }
 0x206   :  { %v414_v63 = vor.u32 1.1754944e-38, %v413_v55  ;;  %vm412_vm7 = vcmp.eq.f32.partialorder %v411_v57, 8.507059e+37 }
 0x209   :  { %v236_v48 = vpop.f32.mrf.mxu2  ;;  %v349_v49 = vpop.f32.mrf.mxu3 }
 0x20a   :  { %v480_v50 = vpop.eup %479  ;;  %v258_v51 = vadd.f32 %v236_v48, %v96_v46  ;;  %v371_v52 = vadd.f32 %v349_v49, %v290_v47 }
 0x20b   :  { %v403_v53 = vmul.f32 %v480_v50, %v400_v45  ;;  %vm408_vm4 = vweird.f32 %v480_v50 }
 0x20c   :  { %274 = vst.msk [vmem:[#allocation2 + $0x68] sm:$0xff] %vm16_vm2, %v258_v51  ;;  %vm409_vm6 = vmor %vm407_vm5, %vm408_vm4 }
 0x20d   :  { %v404_v54 = vsub.f32 1.0, %v403_v53  ;;  %388 = vst.msk [vmem:[#allocation3 + $0x68] sm:$0xff] %vm33_vm3, %v371_v52 }
 0x20f   :  { %v405_v56 = vmul.f32 %v480_v50, %v404_v54 }
 0x211   :  { %v406_v60 = vadd.f32 %v480_v50, %v405_v56  ;;  %v239_v61 = vpop.f32.mrf.mxu2  ;;  %v352_v62 = vpop.f32.mrf.mxu3 }
 0x212   :  { %v259_v0 = vadd.f32 %v239_v61, %v97_v58  ;;  %v372_v1 = vadd.f32 %v352_v62, %v291_v59 }
 0x213   :  { %v410_v2 = vsel %vm409_vm6, %v480_v50, %v406_v60 }
 0x214   :  { %275 = vst.msk [vmem:[#allocation2 + $0x70] sm:$0xff] %vm16_vm2, %v259_v0  ;;  %v415_v4 = vsel %vm412_vm7, %v414_v63, %v410_v2 }
 0x215   :  { %389 = vst.msk [vmem:[#allocation3 + $0x70] sm:$0xff] %vm33_vm3, %v372_v1  ;;  %v416_v5 = vmul.f32 %v415_v4, %v396_v3 }
 0x217   :  { %418 = vst.msk [vmem:[#allocation4] sm:$0x3] %vm417_vm8, %v416_v5 }
 0x218   :  { %429 = dma.vmem_to_hbm [thread:$0]  %s425_s1, 32, %s427_s19, [#allocation5]  }
 0x219   :  { %v242_v8 = vpop.f32.mrf.mxu2  ;;  %v355_v9 = vpop.f32.mrf.mxu3 }
 0x21a   :  { %v260_v10 = vadd.f32 %v242_v8, %v98_v6  ;;  %v373_v11 = vadd.f32 %v355_v9, %v292_v7 }
 0x21c   :  { %276 = vst.msk [vmem:[#allocation2 + $0x78] sm:$0xff] %vm16_vm2, %v260_v10 }
 0x21d   :  { %390 = vst.msk [vmem:[#allocation3 + $0x78] sm:$0xff] %vm33_vm3, %v373_v11 }
 0x21e   :  { %505 = dma.done.wait [#allocation5], 32  }
 0x21f   :  { %506 = vsyncadd [#allocation5], 4294967264 }
 0x220   :  { %434 = vsyncpa [#allocation5], 1 }

</bundles_post_ra>
